<compile_context>
chip_gen: v7x
topology: tpu7x:2x2x1
jax: 0.10.0
libtpu: 0.0.40
codegen_flags: <defaults>
</compile_context>

<pallas_src>
import functools

import jax
import jax.numpy as jnp
import numpy as np
from jax import lax
from jax.experimental import pallas as pl
from jax.experimental.pallas import tpu as pltpu

# ---- static problem sizes (derived from MBConvConfig) ----
N = 2
H = W = 16
HW = H * W                     # 256 pixels / image (2 x 128 lanes -> lane-dense per-image block)
P = N * HW                     # 512 pixels total
C_IN = 16                      # adjust_channels(16, 1.0)
C_OUT = 16
C_EXP = 64                     # adjust_channels(16, expand_ratio=4)
C_SQ = max(1, C_IN // 4)       # 4
KH = KW = 3
EPS = 1e-5                     # nn.BatchNorm2d default eps
PEXP_COLS = C_SQ + 2 + KH * KW  # [wse2 | b2 | bse2 | wdw(9)]


# ---------------------------------------------------------------------------------------------
# roll-direction probe (cached, one-time setup cost — NOT in the forward path): determines
# pltpu.roll's rotation convention so the 3x3 taps line up with the true convolution.
# ---------------------------------------------------------------------------------------------
def _roll_probe_kernel(x_ref, o_ref):
    o_ref[...] = pltpu.roll(x_ref[...], 1, axis=1)


@functools.lru_cache(maxsize=1)
def detect_roll_sign():
    x = lax.broadcasted_iota(jnp.float32, (8, 128), 1)
    y = pl.pallas_call(
        _roll_probe_kernel,
        out_shape=jax.ShapeDtypeStruct((8, 128), jnp.float32),
    )(x)
    v = float(jax.device_get(y)[0, 0])
    # v == 127 -> jnp.roll convention (y[i] = x[i - shift]) -> use shift = -s to read x[i + s]
    # v == 1   -> opposite convention                       -> use shift = +s
    return 1 if v == 1.0 else -1


# ---------------------------------------------------------------------------------------------
# fused MBConv kernel: one grid step == one image (block of HW = 256 lanes)
# ---------------------------------------------------------------------------------------------
def mbconv_kernel(x_ref, w1_ref, pexp_ref, pse1_ref, pproj_ref, o_ref, *, roll_sign):
    x_aug = x_ref[...]                                    # (C_IN+1, HW), last row == 1.0

    # Unpack the coalesced (C_EXP, 15) parameter slab: [wse2(4) | b2 | bse2 | wdw'(9)]
    pexp = pexp_ref[...]
    wse2 = pexp[:, 0:C_SQ]                                # (C_EXP, C_SQ)
    b2 = pexp[:, C_SQ:C_SQ + 1]
    bse2 = pexp[:, C_SQ + 1:C_SQ + 2]
    wdw = pexp[:, C_SQ + 2:C_SQ + 2 + KH * KW]            # (C_EXP, 9), BN scale pre-folded

    # ---- 1x1 expand conv (+ folded BN, bias via the constant-1 input row) + SiLU ----
    t = jnp.dot(w1_ref[...], x_aug, preferred_element_type=jnp.float32)   # (C_EXP, HW)
    t = t * jax.nn.sigmoid(t)                             # SiLU (sigmoid lowers to EUP)

    # ---- depthwise 3x3 conv (stride 1, zero pad 1): separable rolls, 4 rolls total ----
    pidx = lax.broadcasted_iota(jnp.int32, (1, HW), 1)    # pixel index within the image
    i_idx = pidx // W                                     # row
    j_idx = pidx % W                                      # column

    def shift_read(v, s):                                 # result[p] = v[p + s] (wrap masked out)
        return pltpu.roll(v, (roll_sign * s) % HW, axis=1)

    # row rolls first; row masks applied BEFORE the column rolls (required for correctness)
    row_up = (i_idx >= 1).astype(jnp.float32)             # reading row i-1 is valid
    row_dn = (i_idx <= H - 2).astype(jnp.float32)         # reading row i+1 is valid
    u = (shift_read(t, -W) * row_up,                      # di = -1
         t,                                               # di =  0
         shift_read(t, +W) * row_dn)                      # di = +1

    col_lt = (j_idx >= 1).astype(jnp.float32)             # reading col j-1 is valid
    col_rt = (j_idx <= W - 2).astype(jnp.float32)         # reading col j+1 is valid

    acc = None
    for dj, cmask in ((-1, col_lt), (0, None), (1, col_rt)):
        v = None
        for di in (-1, 0, 1):
            tap = (di + 1) * KW + (dj + 1)
            term = u[di + 1] * wdw[:, tap:tap + 1]
            v = term if v is None else v + term
        if dj != 0:
            v = shift_read(v, dj)                         # column roll
        if cmask is not None:
            v = v * cmask                                 # column mask AFTER the column roll
        acc = v if acc is None else acc + v

    a = acc + b2                                          # folded-BN bias
    a = a * jax.nn.sigmoid(a)                             # SiLU, (C_EXP, HW)

    # ---- squeeze-and-excitation (this block is exactly one image: plain reduce, no masks) ----
    pooled = jnp.sum(a, axis=1, keepdims=True) * (1.0 / HW)              # (C_EXP, 1)
    wse1 = pse1_ref[:, 0:C_EXP]                           # (C_SQ, C_EXP)
    bse1 = pse1_ref[:, C_EXP:C_EXP + 1]                   # (C_SQ, 1)
    se = jnp.dot(wse1, pooled, preferred_element_type=jnp.float32) + bse1
    se = se * jax.nn.sigmoid(se)                          # SiLU
    se = jnp.dot(wse2, se, preferred_element_type=jnp.float32) + bse2    # (C_EXP, 1)
    g = jnp.clip(se * (1.0 / 6.0) + 0.5, 0.0, 1.0)        # Hardsigmoid gate
    a = a * g

    # ---- 1x1 project conv (+ folded BN) + residual; stochastic_depth(p=0) == identity ----
    w3 = pproj_ref[:, 0:C_EXP]                            # (C_OUT, C_EXP)
    b3 = pproj_ref[:, C_EXP:C_EXP + 1]
    out = jnp.dot(w3, a, preferred_element_type=jnp.float32) + b3        # (C_OUT, HW)
    out = out + x_aug[0:C_IN, :]                          # residual (stride==1, C_IN==C_OUT)
    o_ref[...] = out                                      # lane-dense (16, 256) store


# ---------------------------------------------------------------------------------------------
# wrapper: layout plumbing (NCHW <-> (C, N*H*W)), BN folding + parameter packing, pallas_call
# ---------------------------------------------------------------------------------------------
def pack_params(p):
    col = lambda v: v.reshape(-1, 1)
    # Fold BatchNorm scales into the conv weights (host side, zero runtime cost).
    w1_aug = jnp.concatenate([p["w1"] * col(p["s1"]), col(p["b1"])], axis=1)   # (C_EXP, C_IN+1)
    wdw_f = (p["wdw"] * p["s2"][:, None, None]).reshape(C_EXP, KH * KW)
    pexp = jnp.concatenate(
        [p["wse2"], col(p["b2"]), col(p["bse2"]), wdw_f], axis=1)              # (C_EXP, 15)
    pse1 = jnp.concatenate([p["wse1"], col(p["bse1"])], axis=1)                # (C_SQ, C_EXP+1)
    pproj = jnp.concatenate([p["w3"] * col(p["s3"]), col(p["b3"])], axis=1)    # (C_OUT, C_EXP+1)
    return w1_aug, pexp, pse1, pproj


def mbconv_forward(x_nchw, params, roll_sign):
    w1_aug, pexp, pse1, pproj = pack_params(params)
    # (N, C, H, W) -> (C, N*H*W): image-major pixel order so each grid block is one image.
    x_cp = jnp.transpose(x_nchw, (1, 0, 2, 3)).reshape(C_IN, P)
    x_aug = jnp.concatenate([x_cp, jnp.ones((1, P), jnp.float32)], axis=0)     # (C_IN+1, P)
    kernel = functools.partial(mbconv_kernel, roll_sign=roll_sign)
    out_cp = pl.pallas_call(
        kernel,
        out_shape=jax.ShapeDtypeStruct((C_OUT, P), jnp.float32),
        grid=(N,),
        in_specs=[
            pl.BlockSpec((C_IN + 1, HW), lambda n: (0, n)),      # per-image activation block
            pl.BlockSpec((C_EXP, C_IN + 1), lambda n: (0, 0)),   # weights: constant index ->
            pl.BlockSpec((C_EXP, PEXP_COLS), lambda n: (0, 0)),  #   DMA'd once, stay resident
            pl.BlockSpec((C_SQ, C_EXP + 1), lambda n: (0, 0)),
            pl.BlockSpec((C_OUT, C_EXP + 1), lambda n: (0, 0)),
        ],
        out_specs=pl.BlockSpec((C_OUT, HW), lambda n: (0, n)),
        compiler_params=pltpu.CompilerParams(
            dimension_semantics=("parallel",)),                  # shard images across TCs (v7x)
    )(x_aug, w1_aug, pexp, pse1, pproj)
    return jnp.transpose(out_cp.reshape(C_OUT, N, H, W), (1, 0, 2, 3))   # back to NCHW


# ---------------- deterministic parameter construction (synthetic, no checkpoint) -------------
def init_params(key):
    ks = iter(jax.random.split(key, 32))

    def nrm(shape, scale=0.1):
        return scale * jax.random.normal(next(ks), shape, jnp.float32)

    def bn(c):
        gamma = 1.0 + 0.1 * jax.random.normal(next(ks), (c,), jnp.float32)
        beta = 0.05 * jax.random.normal(next(ks), (c,), jnp.float32)
        mean = 0.1 * jax.random.normal(next(ks), (c,), jnp.float32)
        var = 0.5 + jax.random.uniform(next(ks), (c,), jnp.float32)
        s = gamma / jnp.sqrt(var + EPS)
        b = beta - mean * s
        return s, b

    p = {}
    p["w1"] = nrm((C_EXP, C_IN))            # expand Conv2d weight [C_EXP, C_IN, 1, 1] squeezed
    p["s1"], p["b1"] = bn(C_EXP)
    p["wdw"] = nrm((C_EXP, KH, KW))         # depthwise Conv2d weight [C_EXP, 1, 3, 3] squeezed
    p["s2"], p["b2"] = bn(C_EXP)
    p["wse1"] = nrm((C_SQ, C_EXP))          # SE fc1 (with bias)
    p["bse1"] = nrm((C_SQ,))
    p["wse2"] = nrm((C_EXP, C_SQ))          # SE fc2 (with bias)
    p["bse2"] = nrm((C_EXP,))
    p["w3"] = nrm((C_OUT, C_EXP))           # project Conv2d weight [C_OUT, C_EXP, 1, 1] squeezed
    p["s3"], p["b3"] = bn(C_OUT)
    return p


# ---------------- pure-JAX reference (independent lowering path, NCHW in/out) ------------------
def mbconv_ref(x_nchw, p):
    hi = jax.lax.Precision.HIGHEST
    x = jnp.transpose(x_nchw, (0, 2, 3, 1))                               # NHWC
    t = jnp.einsum("nhwc,ec->nhwe", x, p["w1"], precision=hi) * p["s1"] + p["b1"]
    t = t * jax.nn.sigmoid(t)
    tp = jnp.pad(t, ((0, 0), (1, 1), (1, 1), (0, 0)))
    dw = jnp.zeros_like(t)
    for di in range(KH):
        for dj in range(KW):
            dw = dw + tp[:, di:di + H, dj:dj + W, :] * p["wdw"][:, di, dj]
    dw = dw * p["s2"] + p["b2"]
    dw = dw * jax.nn.sigmoid(dw)
    pooled = dw.mean(axis=(1, 2))                                         # (N, C_EXP)
    se = jnp.einsum("ne,se->ns", pooled, p["wse1"], precision=hi) + p["bse1"]
    se = se * jax.nn.sigmoid(se)
    se = jnp.einsum("ns,es->ne", se, p["wse2"], precision=hi) + p["bse2"]
    gate = jnp.clip(se / 6.0 + 0.5, 0.0, 1.0)                             # Hardsigmoid
    dw = dw * gate[:, None, None, :]
    out = jnp.einsum("nhwe,oe->nhwo", dw, p["w3"], precision=hi) * p["s3"] + p["b3"]
    out = out + x                                                         # residual
    return jnp.transpose(out, (0, 3, 1, 2))                               # NCHW


if __name__ == "__main__":
    key = jax.random.PRNGKey(0)
    kx, kp = jax.random.split(key)
    x_nchw = jax.random.normal(kx, (N, C_IN, H, W), jnp.float32)          # PyTorch NCHW input
    params = init_params(kp)

    roll_sign = detect_roll_sign()            # cached one-time setup, not in the forward path

    out_nchw = mbconv_forward(x_nchw, params, roll_sign)
    out_nchw = jax.block_until_ready(out_nchw)

    ref_nchw = mbconv_ref(x_nchw, params)
    np.testing.assert_allclose(np.asarray(out_nchw), np.asarray(ref_nchw),
                               rtol=1e-4, atol=1e-4)
    print("KERNEL_OK")
</pallas_src>

<mosaic_0001>
module attributes {stable_mosaic.version = 11 : i64} {
  func.func @_roll_probe_kernel(%arg0: memref<8x128xf32, #tpu.memory_space<vmem>>, %arg1: memref<8x128xf32, #tpu.memory_space<vmem>>) attributes {dimension_semantics = [], scalar_prefetch = 0 : i64, scratch_operands = 0 : i64, tpu.core_type = #tpu.core_type<tc>} {
    %c0 = arith.constant 0 : index
    %c0_0 = arith.constant 0 : index
    %0 = vector.load %arg0[%c0, %c0_0] : memref<8x128xf32, #tpu.memory_space<vmem>>, vector<8x128xf32>
    %c1_i32 = arith.constant 1 : i32
    %1 = tpu.dynamic_rotate %0 by %c1_i32 dim 1 : vector<8x128xf32>, i32 -> vector<8x128xf32>
    %c0_1 = arith.constant 0 : index
    %c0_2 = arith.constant 0 : index
    %2 = vector.load %arg1[%c0_1, %c0_2] : memref<8x128xf32, #tpu.memory_space<vmem>>, vector<8x128xf32>
    tpu.vector_store %arg1[%c0_1, %c0_2], %1 {strides = array<i32>} : memref<8x128xf32, #tpu.memory_space<vmem>>, vector<8x128xf32>,
    return
  }
}

</mosaic_0001>

<bundles_post_ra>
// kernel: tpu_custom_call.1
= control target key start
LH: loop header
LB: loop body
LE: loop exit
PB: predicated region body
PF: predicated region fallthrough
CT: control target
= control target key end

     0   :  { %6 = vsyncpa [#allocation3], 0  ;;  %s128_s0 = inlined_call_operand.hbm [shape: f32[8,128], index: 0, kind: input, shape index: {}]   ;;  %s129_s1 = inlined_call_operand.hbm [shape: f32[8,128], index: 1, kind: output, shape index: {}]  }
   0x1   :  { %7 = vsyncpa [#allocation4], 0  ;;  %s91_s6 = smov [#allocation2]   ;;  %s43_s10 = scalar_lea.hbm %s128_s0, 128 }
   0x2   :  { %s14_s7 = sshll.u32 %s91_s6, 4  ;;  %p44_p0 = scmp.ne.s32.totalorder %s128_s0, %s43_s10  ;;  %s15_s7 = int_to_ptr.vmem [resolvable:$true] %s14_s7 }
   0x3   :  { %p47_p1 = scmp.lt.u32.totalorder %s43_s10, %s128_s0 }
   0x5   :  { %p49_p2 = pnand %p47_p1, %p44_p0 }
   0x7   :  { %52 = shalt.err (!%p49_p2)
}
   0x8   :  { %s53_s15 = scalar_lea.vmem %s15_s7, 128  ;;  %p58_p4 = scmp.lt.s32.totalorder %s15_s7, %s15_s7 }
   0x9   :  { %p54_p3 = scmp.ne.s32.totalorder %s15_s7, %s53_s15  ;;  %p59_p5 = scmp.lt.s32.totalorder %s53_s15, %s53_s15 }
   0xb   :  { %p60_p6 = por %p59_p5, %p58_p4 }
   0xd   :  { %p61_p7 = pnand %p60_p6, %p54_p3 }
   0xf   :  { %64 = shalt.err (!%p61_p7)
}
  0x10   :  { %17 = dma.hbm_to_vmem [thread:$0]  %s128_s0, 128, %s15_s7, [#allocation3]  }
  0x11   :  { %87 = dma.done.wait [#allocation3], 128  }
  0x12   :  { %88 = vsyncadd [#allocation3], 4294967168  ;;  %v21_v0 = vld [vmem:[#allocation2] sm:$0xff]  ;;  %s92_s18 = smov 1   ;;  %s93_s19 = smov [#allocation5]  }
  0x13   :  { %22 = vrot.lane.b32.xlu0 %v21_v0, %s92_s18  ;;  %s31_s20 = sshll.u32 %s93_s19, 4  ;;  %s32_s20 = int_to_ptr.vmem [resolvable:$true] %s31_s20 }
  0x14   :  { %s65_s21 = scalar_lea.vmem %s32_s20, 128  ;;  %p70_p9 = scmp.lt.s32.totalorder %s32_s20, %s32_s20 }
  0x15   :  { %p66_p8 = scmp.ne.s32.totalorder %s32_s20, %s65_s21  ;;  %p71_p10 = scmp.lt.s32.totalorder %s65_s21, %s65_s21 }
  0x17   :  { %p72_p11 = por %p71_p10, %p70_p9 }
  0x19   :  { %p73_p12 = pnand %p72_p11, %p66_p8 }
  0x85   :  { %v23_v1 = vpop.permute.xlu0 %22 }
  0x86   :  { %24 = vst [vmem:[#allocation5] sm:$0xff] %v23_v1 }
  0x87   :  { %76 = shalt.err (!%p73_p12)
}
  0x88   :  { %s77_s0 = scalar_lea.hbm %s129_s1, 128 }
  0x89   :  { %p78_p13 = scmp.ne.s32.totalorder %s129_s1, %s77_s0  ;;  %p81_p0 = scmp.lt.u32.totalorder %s77_s0, %s129_s1 }
  0x8b   :  { %p83_p1 = pnand %p81_p0, %p78_p13 }
  0x8d   :  { %86 = shalt.err (!%p83_p1)
}
  0x8e   :  { %34 = dma.vmem_to_hbm [thread:$0]  %s32_s20, 128, %s129_s1, [#allocation4]  }
  0x8f   :  { %89 = dma.done.wait [#allocation4], 128  }
  0x90   :  { %90 = vsyncadd [#allocation4], 4294967168 }
  0x91   :  { %38 = vsyncpa [#allocation3], 1 }
  0x92   :  { %39 = vsyncpa [#allocation4], 1 }

</bundles_post_ra>
